<compile_context>
chip_gen: v7x
topology: tpu7x:2x2x1
jax: 0.10.0
libtpu: 0.0.40
codegen_flags: <defaults>
</compile_context>

<pallas_src>
import jax
import jax.numpy as jnp
from jax.experimental import pallas as pl
from jax.experimental.pallas import tpu as pltpu


def lmodel_kernel(ctx_ref, tgt_ref, m_ref, b1_ref, w2_ref, b2_ref, loss_ref):
    # ctx_ref : (B, C)      i32   context token ids (C = order-1)
    # tgt_ref : (B, 1)      i32   target class ids
    # m_ref   : (C, Lp, H)  f32   precomputed emb @ W1-slice per position
    # b1_ref  : (1, H)      f32
    # w2_ref  : (H, Lp)     f32   (padded vocab columns are zero)
    # b2_ref  : (1, Lp)     f32   (padded vocab entries are -1e30)
    # loss_ref: (1,)        f32   SMEM scalar output
    B, C = ctx_ref.shape
    _, Lp, H = m_ref.shape

    ctx = ctx_ref[...]

    # One column-iota, reused for the one-hot gather and the target pick.
    cols = jax.lax.broadcasted_iota(jnp.int32, (B, Lp), 1)

    # Fused embedding gather + flatten + layer1, re-associated through M.
    # C is tiny & static -> fully unrolled; the C matmuls are independent.
    h_pre = jnp.broadcast_to(b1_ref[...], (B, H))
    for j in range(C):
        one_hot_j = (cols == ctx[:, j:j + 1]).astype(jnp.float32)        # (B, Lp)
        h_pre = h_pre + jnp.dot(one_hot_j, m_ref[j],
                                preferred_element_type=jnp.float32)      # (B, H)

    # Sigmoid (EUP, f32) + layer2 (MXU).
    h = jax.nn.sigmoid(h_pre)
    z = jnp.dot(h, w2_ref[...], preferred_element_type=jnp.float32) + b2_ref[...]

    # Cross-entropy with integer targets, mean reduction (PyTorch defaults).
    # Padded logits are ~-1e30 -> exp() == 0, so the LSE is unaffected.
    m = jnp.max(z, axis=-1, keepdims=True)                               # (B, 1)
    lse = m + jnp.log(jnp.sum(jnp.exp(z - m), axis=-1, keepdims=True))   # (B, 1)

    tgt = tgt_ref[...]                                                   # (B, 1)
    z_at_target = jnp.sum(jnp.where(cols == tgt, z, 0.0), axis=-1,
                          keepdims=True)                                 # (B, 1)

    per_example_loss = lse - z_at_target                                 # (B, 1)
    loss_ref[0] = jnp.sum(per_example_loss) * (1.0 / B)                  # SMEM scalar


def lmodel_loss(context, target, emb, w1, b1, w2, b2):
    """context: (B, order-1) int token ids; target: (B,) int class ids."""
    B, C = context.shape
    Lv, E = emb.shape
    D_in, H = w1.shape
    assert D_in == C * E

    # Pad vocab to full lane width (multiple of 128).
    Lp = max(128, ((Lv + 127) // 128) * 128)
    pad = Lp - Lv

    # Re-associate the gather: M[j] = emb @ W1[j*E:(j+1)*E, :]  (B-independent,
    # computed once outside the kernel).
    M = jnp.einsum(
        'le,ceh->clh',
        emb.astype(jnp.float32),
        w1.astype(jnp.float32).reshape(C, E, H),
    )
    M = jnp.pad(M, ((0, 0), (0, pad), (0, 0)))                           # (C, Lp, H)
    w2p = jnp.pad(w2.astype(jnp.float32), ((0, 0), (0, pad)))            # (H, Lp)
    b2p = jnp.pad(b2.astype(jnp.float32), (0, pad),
                  constant_values=-1e30).reshape(1, Lp)                  # (1, Lp)

    flops = 2 * B * (C * Lp * H + H * Lp)
    transcendentals = B * (H + Lp)            # sigmoid + softmax exps (approx.)
    bytes_accessed = 4 * (B * C + B + C * Lp * H + H + H * Lp + Lp + 1)

    vmem = pltpu.MemorySpace.VMEM
    loss = pl.pallas_call(
        lmodel_kernel,
        out_shape=jax.ShapeDtypeStruct((1,), jnp.float32),
        in_specs=[
            pl.BlockSpec(memory_space=vmem),  # context
            pl.BlockSpec(memory_space=vmem),  # targets
            pl.BlockSpec(memory_space=vmem),  # M = emb @ W1 slices
            pl.BlockSpec(memory_space=vmem),  # b1
            pl.BlockSpec(memory_space=vmem),  # W2 (vocab-padded)
            pl.BlockSpec(memory_space=vmem),  # b2 (vocab-padded)
        ],
        out_specs=pl.BlockSpec(memory_space=pltpu.MemorySpace.SMEM),
        cost_estimate=pl.CostEstimate(
            flops=flops,
            transcendentals=transcendentals,
            bytes_accessed=bytes_accessed,
        ),
    )(
        context.astype(jnp.int32),
        target.reshape(B, 1).astype(jnp.int32),
        M,
        b1.reshape(1, -1).astype(jnp.float32),
        w2p,
        b2p,
    )
    return loss[0]


if __name__ == "__main__":
    # Small, forward-consistent shapes.
    L = 64          # vocab size
    emb_size = 16
    hid_size = 32
    order = 4
    B = 8           # batch of contexts
    D_in = (order - 1) * emb_size

    key = jax.random.PRNGKey(0)
    k_emb, k_w1, k_b1, k_w2, k_b2, k_ctx, k_tgt = jax.random.split(key, 7)

    # Deterministic parameter init (synthetic; not loaded from a checkpoint).
    emb = jax.random.normal(k_emb, (L, emb_size), dtype=jnp.float32)
    w1 = jax.random.normal(k_w1, (D_in, hid_size), dtype=jnp.float32) * 0.1
    b1 = jax.random.normal(k_b1, (hid_size,), dtype=jnp.float32) * 0.1
    w2 = jax.random.normal(k_w2, (hid_size, L), dtype=jnp.float32) * 0.1
    b2 = jax.random.normal(k_b2, (L,), dtype=jnp.float32) * 0.1

    context = jax.random.randint(k_ctx, (B, order - 1), 0, L, dtype=jnp.int32)
    target = jax.random.randint(k_tgt, (B,), 0, L, dtype=jnp.int32)

    loss = lmodel_loss(context, target, emb, w1, b1, w2, b2)
    jax.block_until_ready(loss)

    # Pure-JAX reference check (f32 end-to-end, so tight tolerance).
    X = emb[context].reshape(B, -1)
    h = jax.nn.sigmoid(X @ w1 + b1)
    z = h @ w2 + b2
    logp = jax.nn.log_softmax(z, axis=-1)
    ref = -jnp.mean(logp[jnp.arange(B), target])
    assert jnp.allclose(loss, ref, atol=1e-5, rtol=1e-5), (loss, ref)

    print("KERNEL_OK")
</pallas_src>

<mosaic_0001>
module attributes {stable_mosaic.version = 11 : i64} {
  func.func @lmodel_kernel(%arg0: memref<8x3xi32, #tpu.memory_space<vmem>>, %arg1: memref<8x1xi32, #tpu.memory_space<vmem>>, %arg2: memref<3x128x32xf32, #tpu.memory_space<vmem>>, %arg3: memref<1x32xf32, #tpu.memory_space<vmem>>, %arg4: memref<32x128xf32, #tpu.memory_space<vmem>>, %arg5: memref<1x128xf32, #tpu.memory_space<vmem>>, %arg6: memref<1xf32, #tpu.memory_space<smem>>) attributes {dimension_semantics = [], scalar_prefetch = 0 : i64, scratch_operands = 0 : i64, tpu.core_type = #tpu.core_type<tc>} {
    %c0 = arith.constant 0 : index
    %c0_0 = arith.constant 0 : index
    %0 = vector.load %arg0[%c0, %c0_0] : memref<8x3xi32, #tpu.memory_space<vmem>>, vector<8x3xi32>
    %1 = tpu.iota {dimensions = array<i32: 1>} : vector<8x128xi32>
    %c0_1 = arith.constant 0 : index
    %c0_2 = arith.constant 0 : index
    %2 = vector.load %arg3[%c0_1, %c0_2] : memref<1x32xf32, #tpu.memory_space<vmem>>, vector<1x32xf32>
    %3 = vector.shape_cast %2 : vector<1x32xf32> to vector<1x32xf32>
    %4 = vector.broadcast %3 : vector<1x32xf32> to vector<8x32xf32>
    %5 = vector.extract_strided_slice %0 {offsets = [0, 0], sizes = [8, 1], strides = [1, 1]} : vector<8x3xi32> to vector<8x1xi32>
    %6 = vector.broadcast %5 : vector<8x1xi32> to vector<8x128xi32>
    %7 = arith.cmpi eq, %1, %6 : vector<8x128xi32>
    %8 = arith.extui %7 : vector<8x128xi1> to vector<8x128xi32>
    %9 = arith.sitofp %8 : vector<8x128xi32> to vector<8x128xf32>
    %c0_3 = arith.constant 0 : index
    %c0_4 = arith.constant 0 : index
    %c0_5 = arith.constant 0 : index
    %10 = vector.load %arg2[%c0_3, %c0_4, %c0_5] : memref<3x128x32xf32, #tpu.memory_space<vmem>>, vector<1x128x32xf32>
    %11 = vector.shape_cast %10 : vector<1x128x32xf32> to vector<128x32xf32>
    %cst = arith.constant dense<0.000000e+00> : vector<8x32xf32>
    %12 = tpu.matmul %9, %11, %cst {dimension_numbers = #tpu.dot_dimension_numbers<[1], [0], [0], [1], [0, 0, 1, 1], [], []>} : vector<8x128xf32>, vector<128x32xf32>, vector<8x32xf32> -> vector<8x32xf32>
    %13 = arith.addf %4, %12 : vector<8x32xf32>
    %14 = vector.extract_strided_slice %0 {offsets = [0, 1], sizes = [8, 1], strides = [1, 1]} : vector<8x3xi32> to vector<8x1xi32>
    %15 = vector.broadcast %14 : vector<8x1xi32> to vector<8x128xi32>
    %16 = arith.cmpi eq, %1, %15 : vector<8x128xi32>
    %17 = arith.extui %16 : vector<8x128xi1> to vector<8x128xi32>
    %18 = arith.sitofp %17 : vector<8x128xi32> to vector<8x128xf32>
    %c1 = arith.constant 1 : index
    %c0_6 = arith.constant 0 : index
    %c0_7 = arith.constant 0 : index
    %19 = vector.load %arg2[%c1, %c0_6, %c0_7] : memref<3x128x32xf32, #tpu.memory_space<vmem>>, vector<1x128x32xf32>
    %20 = vector.shape_cast %19 : vector<1x128x32xf32> to vector<128x32xf32>
    %cst_8 = arith.constant dense<0.000000e+00> : vector<8x32xf32>
    %21 = tpu.matmul %18, %20, %cst_8 {dimension_numbers = #tpu.dot_dimension_numbers<[1], [0], [0], [1], [0, 0, 1, 1], [], []>} : vector<8x128xf32>, vector<128x32xf32>, vector<8x32xf32> -> vector<8x32xf32>
    %22 = arith.addf %13, %21 : vector<8x32xf32>
    %23 = vector.extract_strided_slice %0 {offsets = [0, 2], sizes = [8, 1], strides = [1, 1]} : vector<8x3xi32> to vector<8x1xi32>
    %24 = vector.broadcast %23 : vector<8x1xi32> to vector<8x128xi32>
    %25 = arith.cmpi eq, %1, %24 : vector<8x128xi32>
    %26 = arith.extui %25 : vector<8x128xi1> to vector<8x128xi32>
    %27 = arith.sitofp %26 : vector<8x128xi32> to vector<8x128xf32>
    %c2 = arith.constant 2 : index
    %c0_9 = arith.constant 0 : index
    %c0_10 = arith.constant 0 : index
    %28 = vector.load %arg2[%c2, %c0_9, %c0_10] : memref<3x128x32xf32, #tpu.memory_space<vmem>>, vector<1x128x32xf32>
    %29 = vector.shape_cast %28 : vector<1x128x32xf32> to vector<128x32xf32>
    %cst_11 = arith.constant dense<0.000000e+00> : vector<8x32xf32>
    %30 = tpu.matmul %27, %29, %cst_11 {dimension_numbers = #tpu.dot_dimension_numbers<[1], [0], [0], [1], [0, 0, 1, 1], [], []>} : vector<8x128xf32>, vector<128x32xf32>, vector<8x32xf32> -> vector<8x32xf32>
    %31 = arith.addf %22, %30 : vector<8x32xf32>
    %32 = arith.negf %31 : vector<8x32xf32>
    %33 = math.exp %32 : vector<8x32xf32>
    %cst_12 = arith.constant 1.000000e+00 : f32
    %34 = vector.broadcast %cst_12 : f32 to vector<8x32xf32>
    %35 = arith.addf %34, %33 : vector<8x32xf32>
    %36 = arith.divf %34, %35 : vector<8x32xf32>
    %c0_13 = arith.constant 0 : index
    %c0_14 = arith.constant 0 : index
    %37 = vector.load %arg4[%c0_13, %c0_14] : memref<32x128xf32, #tpu.memory_space<vmem>>, vector<32x128xf32>
    %cst_15 = arith.constant dense<0.000000e+00> : vector<8x128xf32>
    %38 = tpu.matmul %36, %37, %cst_15 {dimension_numbers = #tpu.dot_dimension_numbers<[1], [0], [0], [1], [0, 0, 1, 1], [], []>} : vector<8x32xf32>, vector<32x128xf32>, vector<8x128xf32> -> vector<8x128xf32>
    %c0_16 = arith.constant 0 : index
    %c0_17 = arith.constant 0 : index
    %39 = vector.load %arg5[%c0_16, %c0_17] : memref<1x128xf32, #tpu.memory_space<vmem>>, vector<1x128xf32>
    %40 = vector.broadcast %39 : vector<1x128xf32> to vector<8x128xf32>
    %41 = arith.addf %38, %40 : vector<8x128xf32>
    %cst_18 = arith.constant dense<0xFF800000> : vector<8xf32>
    %42 = vector.multi_reduction <maximumf>, %41, %cst_18 [1] : vector<8x128xf32> to vector<8xf32>
    %43 = vector.shape_cast %42 : vector<8xf32> to vector<8x1xf32>
    %44 = vector.broadcast %43 : vector<8x1xf32> to vector<8x128xf32>
    %45 = arith.subf %41, %44 : vector<8x128xf32>
    %46 = math.exp %45 : vector<8x128xf32>
    %cst_19 = arith.constant dense<0.000000e+00> : vector<8xf32>
    %47 = vector.multi_reduction <add>, %46, %cst_19 [1] : vector<8x128xf32> to vector<8xf32>
    %48 = vector.shape_cast %47 : vector<8xf32> to vector<8x1xf32>
    %49 = math.log %48 : vector<8x1xf32>
    %50 = arith.addf %43, %49 : vector<8x1xf32>
    %c0_20 = arith.constant 0 : index
    %c0_21 = arith.constant 0 : index
    %51 = vector.load %arg1[%c0_20, %c0_21] : memref<8x1xi32, #tpu.memory_space<vmem>>, vector<8x1xi32>
    %52 = vector.broadcast %51 : vector<8x1xi32> to vector<8x128xi32>
    %53 = arith.cmpi eq, %1, %52 : vector<8x128xi32>
    %cst_22 = arith.constant 0.000000e+00 : f32
    %54 = vector.broadcast %cst_22 : f32 to vector<8x128xf32>
    %55 = arith.select %53, %41, %54 : vector<8x128xi1>, vector<8x128xf32>
    %cst_23 = arith.constant dense<0.000000e+00> : vector<8xf32>
    %56 = vector.multi_reduction <add>, %55, %cst_23 [1] : vector<8x128xf32> to vector<8xf32>
    %57 = vector.shape_cast %56 : vector<8xf32> to vector<8x1xf32>
    %58 = arith.subf %50, %57 : vector<8x1xf32>
    %59 = vector.shape_cast %58 : vector<8x1xf32> to vector<1x8x1xf32>
    %cst_24 = arith.constant dense<0.000000e+00> : vector<1xf32>
    %60 = vector.multi_reduction <add>, %59, %cst_24 [1, 2] : vector<1x8x1xf32> to vector<1xf32>
    %61 = vector.shape_cast %60 : vector<1xf32> to vector<1x1x1xf32>
    %62 = vector.extract %61[0, 0, 0] : f32 from vector<1x1x1xf32>
    %cst_25 = arith.constant 1.250000e-01 : f32
    %63 = arith.mulf %62, %cst_25 : f32
    %c0_26 = arith.constant 0 : index
    %64 = memref.load %arg6[%c0_26] : memref<1xf32, #tpu.memory_space<smem>>
    memref.store %63, %arg6[%c0_26] : memref<1xf32, #tpu.memory_space<smem>>
    return
  }
}

</mosaic_0001>

<bundles_post_ra>
// kernel: tpu_custom_call.1
= control target key start
LH: loop header
LB: loop body
LE: loop exit
PB: predicated region body
PF: predicated region fallthrough
CT: control target
= control target key end

     0   :  { %v781_v1 = vmov 1   ;;  %v782_v2 = vmov 2   ;;  %v783_v8 = vmov 0.0|0.0   ;;  %vm784_vm0 = vmmov 0   ;;  %s1044_s0 = inlined_call_operand.vmem [shape: s32[8,3], index: 0, kind: input, shape index: {}]   ;;  %s1045_s1 = inlined_call_operand.vmem [shape: s32[8,1], index: 1, kind: input, shape index: {}]   ;;  %s1046_s2 = inlined_call_operand.vmem [shape: f32[3,128,32], index: 2, kind: input, shape index: {}]   ;;  %s1047_s3 = inlined_call_operand.vmem [shape: f32[1,32], index: 3, kind: input, shape index: {}]   ;;  %s1048_s4 = inlined_call_operand.vmem [shape: f32[32,128], index: 4, kind: input, shape index: {}]   ;;  %s1049_s5 = inlined_call_operand.vmem [shape: f32[1,128], index: 5, kind: input, shape index: {}]   ;;  %s1050_s6 = inlined_call_operand.hbm [shape: f32[1], index: 6, kind: output, shape index: {}]  }
   0x1   :  { %v24_v0 = vld [vmem:[%s1044_s0] sm:$0xff]  ;;  %758 = vset.pattern.permute.xlu0 %v781_v1  ;;  %760 = vset.pattern.permute.xlu1 %v782_v2  ;;  %v457_v4 = vld [vmem:[%s1046_s2 + $0x88] sm:$0xff]  ;;  %v458_v5 = vld [vmem:[%s1046_s2 + $0x90] sm:$0xff]  ;;  %v785_v10 = vmov 0.0   ;;  %v786_v13 = vmov 0  }
   0x2   :  { %v456_v3 = vld [vmem:[%s1046_s2 + $0x80] sm:$0xff]  ;;  %128 = vperm.xlu0 %758, %v24_v0   ;;  %222 = vperm.xlu1 %760, %v24_v0   ;;  %v459_v7 = vld [vmem:[%s1046_s2 + $0x98] sm:$0xff]  ;;  %v461_v12 = vld [vmem:[%s1046_s2 + $0xa8] sm:$0xff] }
   0x3   :  { %v691_v6 = vpack.c.bf16 %v457_v4, %v456_v3  ;;  %690 = vmatprep.subr.bf16.mxu0 %v783_v8  ;;  %666 = vmatprep.subr.bf16.mxu1 %v783_v8  ;;  %v694_v9 = vpack.c.bf16 %v459_v7, %v458_v5  ;;  %v460_v11 = vld [vmem:[%s1046_s2 + $0xa0] sm:$0xff]  ;;  %v41_v15 = vld [vmem:[%s1046_s2 + $0x8] sm:$0xff]  ;;  %v42_v17 = vld [vmem:[%s1046_s2 + $0x10] sm:$0xff] }
   0x4   :  { %617 = vmatprep.mubr.msk.f32.mxu0 %vm784_vm0, %v785_v10  ;;  %582 = vmatprep.mubr.msk.f32.mxu1 %vm784_vm0, %v785_v10  ;;  %v40_v14 = vld [vmem:[%s1046_s2] sm:$0xff]  ;;  %v697_v19 = vpack.c.bf16 %v461_v12, %v460_v11  ;;  %v43_v20 = vld [vmem:[%s1046_s2 + $0x18] sm:$0xff]  ;;  %v462_v21 = vld [vmem:[%s1046_s2 + $0xb0] sm:$0xff] }
   0x5   :  { %692 = vmatpush3.bf16.msra.mxu0 %v691_v6  ;;  %v667_v16 = vpack.c.bf16 %v41_v15, %v40_v14  ;;  %v416_v18 = vld [vmem:[%s1045_s1] sm:$0xff]  ;;  %v463_v22 = vld [vmem:[%s1046_s2 + $0xb8] sm:$0xff]  ;;  %v670_v23 = vpack.c.bf16 %v43_v20, %v42_v17  ;;  %v45_v25 = vld [vmem:[%s1046_s2 + $0x28] sm:$0xff] }
   0x6   :  { %693 = vmatprep.subr.bf16.mxu0 %v783_v8  ;;  %759 = vset.pattern.permute.xlu0 %v786_v13  ;;  %v44_v24 = vld [vmem:[%s1046_s2 + $0x20] sm:$0xff] }
   0x7   :  { %35 = vperm.xlu0 %759, %v24_v0   ;;  %668 = vmatpush3.bf16.msra.mxu1 %v667_v16 }
   0x8   :  { %669 = vmatprep.subr.bf16.mxu1 %v783_v8 }
   0x9   :  { %695 = vmatpush3.bf16.msra.mxu0 %v694_v9 }
   0xa   :  { %696 = vmatprep.subr.bf16.mxu0 %v783_v8 }
   0xb   :  { %418 = vperm.xlu0 %759, %v416_v18  }
   0xc   :  { %11 = vsyncpa [#allocation3], 0  ;;  %v700_v26 = vpack.c.bf16 %v463_v22, %v462_v21  ;;  %v464_v27 = vld [vmem:[%s1046_s2 + $0xc0] sm:$0xff]  ;;  %v465_v28 = vld [vmem:[%s1046_s2 + $0xc8] sm:$0xff]  ;;  %671 = vmatpush3.bf16.msra.mxu1 %v670_v23  ;;  %v673_v29 = vpack.c.bf16 %v45_v25, %v44_v24  ;;  %v25_v55 = vlaneseq  ;;  %v787_v63 = vmov 1.0   ;;  %s769_s0 = scalar_lea.hbm %s1050_s6, 16 }
   0xd   :  { %698 = vmatpush3.bf16.msra.mxu0 %v697_v19  ;;  %672 = vmatprep.subr.bf16.mxu1 %v783_v8  ;;  %v46_v30 = vld [vmem:[%s1046_s2 + $0x30] sm:$0xff]  ;;  %v47_v31 = vld [vmem:[%s1046_s2 + $0x38] sm:$0xff]  ;;  %v703_v32 = vpack.c.bf16 %v465_v28, %v464_v27  ;;  %v48_v36 = vld [vmem:[%s1046_s2 + $0x40] sm:$0xff]  ;;  %vm332_vm4 = vcmask 261120   ;;  %vm425_vm6 = vcmask 7168   ;;  %p770_p0 = scmp.ne.s32.totalorder %s1050_s6, %s769_s0  ;;  %p773_p1 = scmp.lt.u32.totalorder %s769_s0, %s1050_s6 }
   0xe   :  { %699 = vmatprep.subr.bf16.mxu0 %v783_v8  ;;  %v466_v33 = vld [vmem:[%s1046_s2 + $0xd0] sm:$0xff]  ;;  %v467_v34 = vld [vmem:[%s1046_s2 + $0xd8] sm:$0xff]  ;;  %v676_v35 = vpack.c.bf16 %v47_v31, %v46_v30  ;;  %v49_v37 = vld [vmem:[%s1046_s2 + $0x48] sm:$0xff]  ;;  %v954_v58 = vand.u32 127, %v25_v55 }
   0xf   :  { %v706_v38 = vpack.c.bf16 %v467_v34, %v466_v33  ;;  %v468_v39 = vld [vmem:[%s1046_s2 + $0xe0] sm:$0xff]  ;;  %v469_v40 = vld [vmem:[%s1046_s2 + $0xe8] sm:$0xff]  ;;  %v679_v41 = vpack.c.bf16 %v49_v37, %v48_v36  ;;  %v50_v42 = vld [vmem:[%s1046_s2 + $0x50] sm:$0xff]  ;;  %p775_p2 = pnand %p773_p1, %p770_p0 }
  0x10   :  { %674 = vmatpush3.bf16.msra.mxu1 %v673_v29  ;;  %v51_v43 = vld [vmem:[%s1046_s2 + $0x58] sm:$0xff]  ;;  %v709_v44 = vpack.c.bf16 %v469_v40, %v468_v39  ;;  %v470_v45 = vld [vmem:[%s1046_s2 + $0xf0] sm:$0xff]  ;;  %v52_v48 = vld [vmem:[%s1046_s2 + $0x60] sm:$0xff] }
  0x11   :  { %701 = vmatpush3.bf16.msra.mxu0 %v700_v26  ;;  %675 = vmatprep.subr.bf16.mxu1 %v783_v8  ;;  %v471_v46 = vld [vmem:[%s1046_s2 + $0xf8] sm:$0xff]  ;;  %v682_v47 = vpack.c.bf16 %v51_v43, %v50_v42  ;;  %v53_v49 = vld [vmem:[%s1046_s2 + $0x68] sm:$0xff]  ;;  %v54_v52 = vld [vmem:[%s1046_s2 + $0x70] sm:$0xff] }
  0x12   :  { %702 = vmatprep.subr.bf16.mxu0 %v783_v8  ;;  %v712_v50 = vpack.c.bf16 %v471_v46, %v470_v45  ;;  %v685_v51 = vpack.c.bf16 %v53_v49, %v52_v48  ;;  %v55_v53 = vld [vmem:[%s1046_s2 + $0x78] sm:$0xff]  ;;  %v474_v56 = vld [vmem:[%s1046_s2 + $0x100] sm:$0xff]  ;;  %v475_v57 = vld [vmem:[%s1046_s2 + $0x108] sm:$0xff] }
  0x13   :  { %v688_v54 = vpack.c.bf16 %v55_v53, %v54_v52  ;;  %v715_v59 = vpack.c.bf16 %v475_v57, %v474_v56  ;;  %v476_v61 = vld [vmem:[%s1046_s2 + $0x110] sm:$0xff]  ;;  %v477_v62 = vld [vmem:[%s1046_s2 + $0x118] sm:$0xff]  ;;  %v478_v1 = vld [vmem:[%s1046_s2 + $0x120] sm:$0xff] }
  0x14   :  { %677 = vmatpush3.bf16.msra.mxu1 %v676_v35  ;;  %v718_v0 = vpack.c.bf16 %v477_v62, %v476_v61  ;;  %v479_v2 = vld [vmem:[%s1046_s2 + $0x128] sm:$0xff]  ;;  %v480_v5 = vld [vmem:[%s1046_s2 + $0x130] sm:$0xff]  ;;  %v481_v6 = vld [vmem:[%s1046_s2 + $0x138] sm:$0xff] }
  0x15   :  { %704 = vmatpush3.bf16.msra.mxu0 %v703_v32  ;;  %678 = vmatprep.subr.bf16.mxu1 %v783_v8  ;;  %v721_v4 = vpack.c.bf16 %v479_v2, %v478_v1  ;;  %v724_v7 = vpack.c.bf16 %v481_v6, %v480_v5  ;;  %v482_v9 = vld [vmem:[%s1046_s2 + $0x140] sm:$0xff]  ;;  %v483_v11 = vld [vmem:[%s1046_s2 + $0x148] sm:$0xff]  ;;  %v485_v13 = vld [vmem:[%s1046_s2 + $0x158] sm:$0xff] }
  0x16   :  { %705 = vmatprep.subr.bf16.mxu0 %v783_v8  ;;  %v727_v12 = vpack.c.bf16 %v483_v11, %v482_v9  ;;  %v486_v15 = vld [vmem:[%s1046_s2 + $0x160] sm:$0xff]  ;;  %v487_v16 = vld [vmem:[%s1046_s2 + $0x168] sm:$0xff]  ;;  %v488_v18 = vld [vmem:[%s1046_s2 + $0x170] sm:$0xff] }
  0x17   :  { %v733_v17 = vpack.c.bf16 %v487_v16, %v486_v15  ;;  %v489_v19 = vld [vmem:[%s1046_s2 + $0x178] sm:$0xff]  ;;  %v321_v22 = vld [vmem:[%s1048_s4] sm:$0xff]  ;;  %v322_v23 = vld [vmem:[%s1048_s4 + $0x8] sm:$0xff] }
  0x18   :  { %680 = vmatpush3.bf16.msra.mxu1 %v679_v41  ;;  %v736_v20 = vpack.c.bf16 %v489_v19, %v488_v18  ;;  %v323_v24 = vld [vmem:[%s1048_s4 + $0x10] sm:$0xff]  ;;  %v739_v25 = vpack.c.bf16 %v322_v23, %v321_v22  ;;  %v324_v26 = vld [vmem:[%s1048_s4 + $0x18] sm:$0xff]  ;;  %v452_v30 = vld [vmem:[%s1047_s3] ss:$0 sm:$0xff] }
  0x19   :  { %707 = vmatpush3.bf16.msra.mxu0 %v706_v38  ;;  %681 = vmatprep.subr.bf16.mxu1 %v783_v8  ;;  %v742_v27 = vpack.c.bf16 %v324_v26, %v323_v24 }
  0x1a   :  { %708 = vmatprep.subr.bf16.mxu0 %v783_v8 }
  0x1c   :  { %683 = vmatpush3.bf16.msra.mxu1 %v682_v47 }
  0x1d   :  { %710 = vmatpush3.bf16.msra.mxu0 %v709_v44  ;;  %684 = vmatprep.subr.bf16.mxu1 %v783_v8 }
  0x1e   :  { %711 = vmatprep.subr.bf16.mxu0 %v783_v8 }
  0x20   :  { %686 = vmatpush3.bf16.msra.mxu1 %v685_v51 }
  0x21   :  { %713 = vmatpush3.bf16.msra.mxu0 %v712_v50  ;;  %687 = vmatprep.subr.bf16.mxu1 %v783_v8 }
  0x22   :  { %714 = vmatprep.subr.bf16.mxu0 %v783_v8 }
  0x24   :  { %689 = vmatpush3.bf16.msra.mxu1 %v688_v54 }
  0x25   :  { %738 = vmatprep.subr.bf16.mxu1 %v783_v8 }
  0x81   :  { %v129_v60 = vpop.permute.xlu0 %128  ;;  %v223_v21 = vpop.permute.xlu1 %222 }
  0x82   :  { %vm130_vm1 = vcmp.eq.s32.totalorder %v954_v58, %v129_v60  ;;  %vm224_vm3 = vcmp.eq.s32.totalorder %v954_v58, %v223_v21 }
  0x83   :  { %618 = vmatmul.mubr.msk.f32.vlgmr.msra.gmra.mrb[0].mxu0 %vm130_vm1, %v787_v63 }
  0x84   :  { %716 = vmatpush3.bf16.msra.mxu0 %v715_v59  ;;  %652 = vmatprep.mubr.msk.f32.mxu0 %vm784_vm0, %v785_v10 }
  0x85   :  { %717 = vmatprep.subr.bf16.mxu0 %v783_v8 }
  0x86   :  { %v36_v3 = vpop.permute.xlu0 %35 }
  0x87   :  { %vm37_vm2 = vcmp.eq.s32.totalorder %v954_v58, %v36_v3 }
  0x88   :  { %719 = vmatpush3.bf16.msra.mxu0 %v718_v0  ;;  %583 = vmatmul.mubr.msk.f32.vlgmr.msra.gmra.mrb[0].mxu1 %vm37_vm2, %v787_v63 }
  0x89   :  { %720 = vmatprep.subr.bf16.mxu0 %v783_v8  ;;  %663 = vmatprep.mubr.msk.f32.mxu1 %vm784_vm0, %v785_v10  ;;  %v484_v10 = vld [vmem:[%s1046_s2 + $0x150] sm:$0xff] }
  0x8a   :  { %v730_v14 = vpack.c.bf16 %v485_v13, %v484_v10  ;;  %740 = vmatpush3.bf16.msra.mxu1 %v739_v25  ;;  %v419_v42 = vpop.permute.xlu0 %418 }
  0x8b   :  { %741 = vmatprep.subr.bf16.mxu1 %v783_v8  ;;  %vm420_vm5 = vcmp.eq.s32.totalorder %v954_v58, %v419_v42 }
  0x8c   :  { %722 = vmatpush3.bf16.msra.mxu0 %v721_v4 }
  0x8d   :  { %723 = vmatprep.subr.bf16.mxu0 %v783_v8 }
  0x8e   :  { %743 = vmatpush3.bf16.msra.mxu1 %v742_v27 }
  0x90   :  { %725 = vmatpush3.bf16.msra.mxu0 %v724_v7 }
  0x91   :  { %726 = vmatprep.subr.bf16.mxu0 %v783_v8 }
  0x94   :  { %728 = vmatpush3.bf16.msra.mxu0 %v727_v12 }
  0x95   :  { %729 = vmatprep.subr.bf16.mxu0 %v783_v8 }
  0x98   :  { %731 = vmatpush3.bf16.msra.mxu0 %v730_v14 }
  0x99   :  { %732 = vmatprep.subr.bf16.mxu0 %v783_v8 }
  0x9c   :  { %734 = vmatpush3.bf16.msra.mxu0 %v733_v17 }
  0x9d   :  { %735 = vmatprep.subr.bf16.mxu0 %v783_v8  ;;  %v492_v8 = vld [vmem:[%s1049_s5] ss:$0 sm:$0xff] }
  0xa0   :  { %737 = vmatpush3.bf16.msra.mxu0 %v736_v20 }
  0xa3   :  { %653 = vmatmul.mubr.msk.f32.vlgmr.msra.gmra.mrb[0].mxu0 %vm224_vm3, %v787_v63 }
 0x15b   :  { %v122_v28 = vpop.f32.mrb[0].mxu1 }
 0x15c   :  { %v584_v29 = vpop.f32.mrb[1].mxu1  ;;  %v126_v31 = vadd.f32 %v452_v30, %v122_v28 }
 0x176   :  { %v310_v32 = vpop.f32.mrb[0].mxu0 }
 0x177   :  { %v745_v33 = vadd.f32 %v310_v32, %v126_v31  ;;  %v654_v34 = vpop.f32.mrb[1].mxu0 }
 0x179   :  { %v491_v35 = vmul.f32 -1.442695, %v745_v33 }
 0x17b   :  { %761 = vpow2.f32 %v491_v35 }
 0x185   :  { %v762_v36 = vpop.eup %761 }
 0x186   :  { %v318_v37 = vadd.f32 1.0, %v762_v36 }
 0x188   :  { %763 = vrcp.f32 %v318_v37 }
 0x192   :  { %v764_v38 = vpop.eup %763 }
 0x193   :  { %664 = vmatmul.mubr.msk.f32.vlgmr.msra.gmra.mrb[2].mxu1 %vm332_vm4, %v764_v38 }
 0x266   :  { %v402_v39 = vpop.f32.mrb[2].mxu1 }
 0x267   :  { %v403_v40 = vadd.f32 %v492_v8, %v402_v39  ;;  %v665_v41 = vpop.f32.mrb[3].mxu1 }
 0x269   :  { %406 = vmax.xlane.f32.xlu1 %v403_v40  ;;  %v421_v43 = vsel %vm420_vm5, %v403_v40, 0.0 }
 0x26d   :  { %422 = vadd.xlane.f32.xlu1 %v421_v43 }
 0x2f6   :  { %v407_v44 = vpop.xlane.xlu1 %406 }
 0x2f7   :  { %v408_v45 = vsub.f32 %v403_v40, %v407_v44 }
 0x2f9   :  { %v409_v46 = vmul.f32 1.442695, %v408_v45 }
 0x2fa   :  { %v423_v52 = vpop.xlane.xlu1 %422 }
 0x2fb   :  { %765 = vpow2.f32 %v409_v46 }
 0x305   :  { %v766_v47 = vpop.eup %765 }
 0x306   :  { %411 = vadd.xlane.f32.xlu0 %v766_v47 }
 0x393   :  { %v412_v48 = vpop.xlane.xlu0 %411 }
 0x394   :  { %767 = vlog2.f32 %v412_v48 }
 0x39e   :  { %v768_v49 = vpop.eup %767 }
 0x39f   :  { %v414_v50 = vmul.f32 0.6931472, %v768_v49 }
 0x3a1   :  { %v415_v51 = vadd.f32 %v414_v50, %v407_v44 }
 0x3a3   :  { %v424_v53 = vsub.f32 %v415_v51, %v423_v52 }
 0x3a5   :  { %v426_v54 = vsel %vm425_vm6, %v424_v53, 0.0 }
 0x3a6   :  { %427 = vadd.xlane.f32.xlu1 %v426_v54 }
 0x433   :  { %v428_v55 = vpop.xlane.xlu1 %427 }
 0x434   :  { %v429_v56 = vrot.slane %v428_v55, 4 }
 0x436   :  { %v430_v57 = vadd.f32 %v429_v56, %v428_v55 }
 0x438   :  { %v431_v58 = vrot.slane %v430_v57, 2 }
 0x43a   :  { %v432_v59 = vadd.f32 %v431_v58, %v430_v57 }
 0x43c   :  { %v433_v60 = vrot.slane %v432_v59, 1 }
 0x43e   :  { %v434_v61 = vadd.f32 %v433_v60, %v432_v59 }
 0x440   :  { %748 = vpush %v434_v61 }
 0x471   :  { %s749_s3 = spop %748 }
 0x472   :  { %s436_s5 = smul.f32 0.125, %s749_s3 }
 0x474   :  { %438 = sst [smem:[#allocation2]] %s436_s5 }
 0x475   :  { %778 = shalt.err (!%p775_p2)
}
 0x476   :  { %s788_s9 = smov [#allocation2]  }
 0x477   :  { %446 = dma.smem_to_hbm %s788_s9, 16, %s1050_s6, [#allocation3]  }
 0x478   :  { %779 = dma.done.wait [#allocation3], 16  }
 0x479   :  { %780 = vsyncadd [#allocation3], 4294967280 }
 0x47a   :  { %450 = sfence }
 0x47b   :  { %451 = vsyncpa [#allocation3], 1 }

</bundles_post_ra>
